<compile_context>
chip_gen: v7x
topology: tpu7x:2x2x1
jax: 0.10.0
libtpu: 0.0.40
codegen_flags: <defaults>
</compile_context>

<pallas_src>
import functools

import jax
import jax.numpy as jnp
from jax import lax
from jax.experimental import pallas as pl
from jax.experimental.pallas import tpu as pltpu

_LANES = 128
_SLAB_ROWS = 64          # (64, 128) f32 accumulator = 8 vregs
_MAX_TILE_ROWS = 8192    # 4 MiB f32 per input tile at most


def _abs_diff_sum_kernel(x1_ref, x2_ref, out_ref, *, tile_rows, slab_rows,
                         total_rows, ragged):
    """Sum |x1 - x2| over this (tile_rows, 128) block into an (8, 128) partial."""
    slabs_per_tile = tile_rows // slab_rows

    def slab_absdiff(r0):
        a = x1_ref[pl.ds(r0, slab_rows), :].astype(jnp.float32)
        b = x2_ref[pl.ds(r0, slab_rows), :].astype(jnp.float32)
        return jnp.abs(a - b)

    def body(i, acc):
        return acc + slab_absdiff(pl.multiple_of(i * slab_rows, slab_rows))

    acc0 = jnp.zeros((slab_rows, _LANES), jnp.float32)

    if not ragged:
        # Every grid block is exactly full: static trip count, lightly unrolled.
        acc = lax.fori_loop(0, slabs_per_tile, body, acc0,
                            unroll=min(8, slabs_per_tile))
    else:
        # Only the last block can be short; drive the slab count from scalars so
        # fully-invalid slabs are never loaded, and mask only ONE partial slab.
        pid = pl.program_id(0)
        rows_here = jnp.minimum(total_rows - pid * tile_rows, tile_rows)
        full_slabs = rows_here // slab_rows
        acc = lax.fori_loop(0, full_slabs, body, acc0)

        # At most one partial slab per block; clamp its start inside the block
        # and mask rows past the valid extent (select blocks NaN/garbage).
        last_start = jnp.minimum(full_slabs, slabs_per_tile - 1) * slab_rows
        d = slab_absdiff(pl.multiple_of(last_start, slab_rows))
        row = last_start + lax.broadcasted_iota(
            jnp.int32, (slab_rows, _LANES), 0)
        valid = jnp.logical_and(row < rows_here, full_slabs < slabs_per_tile)
        acc = acc + jnp.where(valid, d, jnp.float32(0.0))

    # Fold the (slab_rows, 128) accumulator into a lane-dense (8, 128) partial
    # with a short VALU tree (vreg-aligned, no cross-lane reduce in-kernel).
    out_ref[...] = jnp.sum(acc.reshape(slab_rows // 8, 8, _LANES), axis=0)


def _round_up(x, k):
    return -(-x // k) * k


def fft_loss(img1, img2):
    """Pallas implementation of FFTLoss(loss_f=L1Loss, reduction='mean')."""
    assert img1.shape == img2.shape, "inputs must have identical shapes"
    n_elems = int(img1.size)
    if n_elems == 0:
        return jnp.float32(0.0)

    x1 = img1.reshape(-1)
    x2 = img2.reshape(-1)

    def _jnp_abs_sum(a, b):
        return jnp.sum(jnp.abs(a.astype(jnp.float32) - b.astype(jnp.float32)))

    m = n_elems // _LANES          # full rows of 128 lanes
    n_main = m * _LANES

    # Tiny inputs: not worth a kernel launch.
    if m < 8:
        return _jnp_abs_sum(x1, x2) * jnp.float32(1.0 / n_elems)

    # Sub-128-element tail (only when n_elems % 128 != 0): tiny jnp expression.
    if n_main < n_elems:
        tail = _jnp_abs_sum(x1[n_main:], x2[n_main:])
        a2 = x1[:n_main].reshape(m, _LANES)   # prefix slice (only ragged sizes)
        b2 = x2[:n_main].reshape(m, _LANES)
    else:
        tail = jnp.float32(0.0)
        a2 = x1.reshape(m, _LANES)            # free bitcast, no copy
        b2 = x2.reshape(m, _LANES)

    # ---- per-chip tile sizing ------------------------------------------------
    itemsize = jnp.dtype(img1.dtype).itemsize
    try:
        vmem_cap = int(pltpu.get_tpu_info().vmem_capacity_bytes)
    except Exception:  # pragma: no cover - conservative fallback
        vmem_cap = 64 << 20

    # Both inputs, double-buffered, one 128-lane row.
    row_bytes = 2 * 2 * _LANES * itemsize
    cap = ((vmem_cap // 4) // row_bytes) // _SLAB_ROWS * _SLAB_ROWS
    tile_cap = max(_SLAB_ROWS, min(_MAX_TILE_ROWS, cap))

    if m <= 64:
        tile_rows = (m // 8) * 8                      # >= 8, multiple of 8
    else:
        # Aim for >= 2 grid steps so both v7x TensorCores get work.
        half = _round_up(-(-m // 2), _SLAB_ROWS)
        tile_rows = max(_SLAB_ROWS, min(tile_cap, half))
    slab_rows = min(_SLAB_ROWS, tile_rows)

    num_tiles = -(-m // tile_rows)
    ragged = (m % tile_rows) != 0

    in_tile_bytes = 2 * 2 * tile_rows * _LANES * itemsize
    cp_kwargs = dict(dimension_semantics=("parallel",))
    needed = in_tile_bytes + (4 << 20)
    if needed > (16 << 20):
        # Raise the scoped-VMEM limit only when the big tiles actually need it
        # (clears the 16 MiB v5e default); always leave physical headroom.
        cp_kwargs["vmem_limit_bytes"] = int(
            min(vmem_cap // 2, max(needed, 32 << 20)))
    compiler_params = pltpu.CompilerParams(**cp_kwargs)

    kernel = functools.partial(
        _abs_diff_sum_kernel,
        tile_rows=tile_rows,
        slab_rows=slab_rows,
        total_rows=m,
        ragged=ragged,
    )

    partials = pl.pallas_call(
        kernel,
        out_shape=jax.ShapeDtypeStruct((num_tiles * 8, _LANES), jnp.float32),
        grid_spec=pltpu.PrefetchScalarGridSpec(
            num_scalar_prefetch=0,
            grid=(num_tiles,),
            in_specs=[
                pl.BlockSpec((tile_rows, _LANES), lambda i: (i, 0)),
                pl.BlockSpec((tile_rows, _LANES), lambda i: (i, 0)),
            ],
            # Disjoint lane-dense (8, 128) partial per grid step -> the grid
            # axis is truly parallel (megacore friendly on v7x).
            out_specs=pl.BlockSpec((8, _LANES), lambda i: (i, 0)),
        ),
        compiler_params=compiler_params,
    )(a2, b2)

    # rfft over the length-2 stacked axis duplicates each real sample into two
    # real bins, so mean(|F1 - F2|) over 2N bins == sum(|img1 - img2|) / N.
    total = jnp.sum(partials) + tail
    return total * jnp.float32(1.0 / n_elems)


if __name__ == "__main__":
    key = jax.random.PRNGKey(0)
    k1, k2, k3, k4, k5, k6 = jax.random.split(key, 6)

    # NCHW inputs matching the PyTorch module's expected image tensors.
    img1 = jax.random.normal(k1, (2, 4, 16, 16), dtype=jnp.float32)
    img2 = jax.random.normal(k2, (2, 4, 16, 16), dtype=jnp.float32)
    loss = jax.block_until_ready(fft_loss(img1, img2))
    ref = jnp.mean(jnp.abs(img1 - img2))
    assert jnp.allclose(loss, ref, rtol=1e-5, atol=1e-6), (loss, ref)

    # Aligned multi-tile / multi-slab static path.
    c = jax.random.normal(k3, (4, 8, 64, 64), dtype=jnp.float32)
    d = jax.random.normal(k4, (4, 8, 64, 64), dtype=jnp.float32)
    loss2 = jax.block_until_ready(fft_loss(c, d))
    ref2 = jnp.mean(jnp.abs(c - d))
    assert jnp.allclose(loss2, ref2, rtol=1e-5, atol=1e-6), (loss2, ref2)

    # Ragged size (exercises the prefix + masked partial slab + jnp tail path).
    a = jax.random.normal(k5, (1, 3, 60, 60), dtype=jnp.float32)
    b = jax.random.normal(k6, (1, 3, 60, 60), dtype=jnp.float32)
    loss3 = jax.block_until_ready(fft_loss(a, b))
    ref3 = jnp.mean(jnp.abs(a - b))
    assert jnp.allclose(loss3, ref3, rtol=1e-5, atol=1e-6), (loss3, ref3)

    print("KERNEL_OK")
</pallas_src>

<mosaic_0001>
module attributes {stable_mosaic.version = 11 : i64} {
  func.func @_abs_diff_sum_kernel(%arg0: i32, %arg1: memref<16x128xf32, #tpu.memory_space<vmem>>, %arg2: memref<16x128xf32, #tpu.memory_space<vmem>>, %arg3: memref<8x128xf32, #tpu.memory_space<vmem>>) attributes {dimension_semantics = [#tpu.dimension_semantics<parallel>], iteration_bounds = array<i64: 1>, scalar_prefetch = 0 : i64, scratch_operands = 0 : i64, tpu.core_type = #tpu.core_type<tc>, window_params = [{transform_indices = @transform_0, window_bounds = array<i64: 16, 128>}, {transform_indices = @transform_1, window_bounds = array<i64: 16, 128>}, {transform_indices = @transform_2, window_bounds = array<i64: 8, 128>}]} {
    %cst = arith.constant 0.000000e+00 : f32
    %0 = vector.broadcast %cst : f32 to vector<16x128xf32>
    %c0_i32 = arith.constant 0 : i32
    %c16_i32 = arith.constant 16 : i32
    %1 = arith.muli %c0_i32, %c16_i32 : i32
    %2 = tpu.assume_multiple %1, 16 : i32
    %3 = arith.index_cast %2 : i32 to index
    %c0 = arith.constant 0 : index
    %4 = vector.load %arg1[%3, %c0] : memref<16x128xf32, #tpu.memory_space<vmem>>, vector<16x128xf32>
    %5 = arith.index_cast %2 : i32 to index
    %c0_0 = arith.constant 0 : index
    %6 = vector.load %arg2[%5, %c0_0] : memref<16x128xf32, #tpu.memory_space<vmem>>, vector<16x128xf32>
    %7 = arith.subf %4, %6 : vector<16x128xf32>
    %8 = math.absf %7 : vector<16x128xf32>
    %9 = arith.addf %0, %8 : vector<16x128xf32>
    %c1_i32 = arith.constant 1 : i32
    %10 = vector.shape_cast %9 : vector<16x128xf32> to vector<2x8x128xf32>
    %cst_1 = arith.constant dense<0.000000e+00> : vector<8x128xf32>
    %11 = vector.multi_reduction <add>, %10, %cst_1 [0] : vector<2x8x128xf32> to vector<8x128xf32>
    %c0_2 = arith.constant 0 : index
    %c0_3 = arith.constant 0 : index
    %12 = vector.load %arg3[%c0_2, %c0_3] : memref<8x128xf32, #tpu.memory_space<vmem>>, vector<8x128xf32>
    tpu.vector_store %arg3[%c0_2, %c0_3], %11 {strides = array<i32>} : memref<8x128xf32, #tpu.memory_space<vmem>>, vector<8x128xf32>,
    return
  }
  func.func @transform_0(%arg0: i32) -> (i32, i32) {
    %c0_i32 = arith.constant 0 : i32
    %c0_i32_0 = arith.constant 0 : i32
    return %arg0, %c0_i32 : i32, i32
  }
  func.func @transform_1(%arg0: i32) -> (i32, i32) {
    %c0_i32 = arith.constant 0 : i32
    %c0_i32_0 = arith.constant 0 : i32
    return %arg0, %c0_i32 : i32, i32
  }
  func.func @transform_2(%arg0: i32) -> (i32, i32) {
    %c0_i32 = arith.constant 0 : i32
    %c0_i32_0 = arith.constant 0 : i32
    return %arg0, %c0_i32 : i32, i32
  }
}

</mosaic_0001>

<bundles_post_ra>
// kernel: tpu_custom_call.1
= control target key start
LH: loop header
LB: loop body
LE: loop exit
PB: predicated region body
PF: predicated region fallthrough
CT: control target
= control target key end

     0   :  { %7 = vsyncpa [#allocation3], 0  ;;  %s201_s0 = inlined_call_operand.hbm [shape: f32[16,128], index: 0, kind: input, shape index: {}]   ;;  %s202_s1 = inlined_call_operand.hbm [shape: f32[16,128], index: 1, kind: input, shape index: {}]   ;;  %s203_s2 = inlined_call_operand.hbm [shape: f32[8,128], index: 2, kind: output, shape index: {}]  }
   0x1   :  { %8 = vsyncpa [#allocation6], 0 }
   0x2   :  { %9 = vsyncpa [#allocation4], 0  ;;  %s145_s9 = smov [#allocation2]   ;;  %s73_s13 = scalar_lea.hbm %s201_s0, 256 }
   0x3   :  { %s15_s10 = sshll.u32 %s145_s9, 4  ;;  %p74_p0 = scmp.ne.s32.totalorder %s201_s0, %s73_s13  ;;  %s16_s10 = int_to_ptr.vmem [resolvable:$true] %s15_s10 }
   0x4   :  { %p77_p1 = scmp.lt.u32.totalorder %s73_s13, %s201_s0 }
   0x6   :  { %p79_p2 = pnand %p77_p1, %p74_p0 }
   0x8   :  { %82 = shalt.err (!%p79_p2)
}
   0x9   :  { %s83_s18 = scalar_lea.vmem %s16_s10, 256  ;;  %p88_p4 = scmp.lt.s32.totalorder %s16_s10, %s16_s10 }
   0xa   :  { %p84_p3 = scmp.ne.s32.totalorder %s16_s10, %s83_s18  ;;  %p89_p5 = scmp.lt.s32.totalorder %s83_s18, %s83_s18 }
   0xc   :  { %p90_p6 = por %p89_p5, %p88_p4 }
   0xe   :  { %p91_p7 = pnand %p90_p6, %p84_p3 }
  0x10   :  { %94 = shalt.err (!%p91_p7)
}
  0x11   :  { %s146_s19 = smov 128   ;;  %s147_s20 = smov 8  }
  0x12   :  { %21 = dma.hbm_to_vmem [thread:$0]  %s201_s0, 256, %s16_s10, [#allocation3], %s146_s19, %s146_s19, %s147_s20  }
  0x13   :  { %s148_s23 = smov [#allocation5]   ;;  %s95_s27 = scalar_lea.hbm %s202_s1, 256 }
  0x14   :  { %s27_s24 = sshll.u32 %s148_s23, 4  ;;  %p96_p8 = scmp.ne.s32.totalorder %s202_s1, %s95_s27  ;;  %s28_s24 = int_to_ptr.vmem [resolvable:$true] %s27_s24 }
  0x15   :  { %p99_p9 = scmp.lt.u32.totalorder %s95_s27, %s202_s1 }
  0x17   :  { %p101_p10 = pnand %p99_p9, %p96_p8 }
  0x19   :  { %104 = shalt.err (!%p101_p10)
}
  0x1a   :  { %s105_s4 = scalar_lea.vmem %s28_s24, 256  ;;  %p110_p12 = scmp.lt.s32.totalorder %s28_s24, %s28_s24 }
  0x1b   :  { %p106_p11 = scmp.ne.s32.totalorder %s28_s24, %s105_s4  ;;  %p111_p13 = scmp.lt.s32.totalorder %s105_s4, %s105_s4 }
  0x1d   :  { %p112_p0 = por %p111_p13, %p110_p12 }
  0x1f   :  { %p113_p1 = pnand %p112_p0, %p106_p11 }
  0x21   :  { %116 = shalt.err (!%p113_p1)
}
  0x22   :  { %33 = dma.hbm_to_vmem [thread:$0]  %s202_s1, 256, %s28_s24, [#allocation6], %s146_s19, %s146_s19, %s147_s20  }
  0x23   :  { %139 = dma.done.wait [#allocation3], 256  }
  0x24   :  { %140 = vsyncadd [#allocation3], 4294967040 }
  0x25   :  { %141 = dma.done.wait [#allocation6], 256  }
  0x26   :  { %142 = vsyncadd [#allocation6], 4294967040  ;;  %v40_v0 = vld [vmem:[#allocation2] sm:$0xff]  ;;  %v41_v1 = vld [vmem:[#allocation2 + $0x8] sm:$0xff]  ;;  %s149_s6 = smov [#allocation7]  }
  0x27   :  { %v42_v2 = vld [vmem:[#allocation5] sm:$0xff]  ;;  %v43_v3 = vld [vmem:[#allocation5 + $0x8] sm:$0xff]  ;;  %s58_s7 = sshll.u32 %s149_s6, 4  ;;  %s59_s7 = int_to_ptr.vmem [resolvable:$true] %s58_s7 }
  0x28   :  { %v44_v4 = vsub.f32 %v40_v0, %v42_v2  ;;  %v45_v5 = vsub.f32 %v41_v1, %v43_v3  ;;  %s117_s8 = scalar_lea.vmem %s59_s7, 128  ;;  %p122_p3 = scmp.lt.s32.totalorder %s59_s7, %s59_s7 }
  0x29   :  { %p118_p2 = scmp.ne.s32.totalorder %s59_s7, %s117_s8  ;;  %p123_p4 = scmp.lt.s32.totalorder %s117_s8, %s117_s8 }
  0x2a   :  { %v46_v6 = vand.u32 2147483647, %v44_v4  ;;  %v47_v7 = vand.u32 2147483647, %v45_v5 }
  0x2b   :  { %p124_p5 = por %p123_p4, %p122_p3 }
  0x2c   :  { %v50_v8 = vadd.f32 %v47_v7, %v46_v6 }
  0x2d   :  { %p125_p6 = pnand %p124_p5, %p118_p2 }
  0x2e   :  { %51 = vst [vmem:[#allocation7] sm:$0xff] %v50_v8 }
  0x2f   :  { %128 = shalt.err (!%p125_p6)
}
  0x30   :  { %s129_s10 = scalar_lea.hbm %s203_s2, 128 }
  0x31   :  { %p130_p7 = scmp.ne.s32.totalorder %s203_s2, %s129_s10  ;;  %p133_p8 = scmp.lt.u32.totalorder %s129_s10, %s203_s2 }
  0x33   :  { %p135_p9 = pnand %p133_p8, %p130_p7 }
  0x35   :  { %138 = shalt.err (!%p135_p9)
}
  0x36   :  { %61 = dma.vmem_to_hbm [thread:$0]  %s59_s7, 128, %s203_s2, [#allocation4]  }
  0x37   :  { %143 = dma.done.wait [#allocation4], 128  }
  0x38   :  { %144 = vsyncadd [#allocation4], 4294967168 }
  0x39   :  { %65 = vsyncpa [#allocation3], 1 }
  0x3a   :  { %66 = vsyncpa [#allocation6], 1 }
  0x3b   :  { %67 = vsyncpa [#allocation4], 1 }

</bundles_post_ra>
